<compile_context>
chip_gen: v6e
topology: v6e:2x2x1
jax: 0.10.0
libtpu: 0.0.40
codegen_flags: <defaults>
</compile_context>

<pallas_src>
import jax
import jax.numpy as jnp
from jax import lax
from jax.experimental import pallas as pl
from jax.experimental.pallas import tpu as pltpu


# ----------------------------- Pallas kernel -------------------------------

def s4_chunk_kernel(x_ref, wu_ref, pc_ref, o_ref, h_ref):
    """One (batch_tile, chunk) grid step of the chunked SSM scan.

    x_ref : (1, BT, T*D_in)  VMEM   chunk of inputs, time flattened into lanes
    wu_ref: (T*D_in, T*N)    VMEM   precomputed blockdiag(B^T) @ M
    pc_ref: (N, T*N)         VMEM   precomputed [(A^T)^1 | ... | (A^T)^T]
    o_ref : (1, BT, T*N)     VMEM   chunk of outputs (lane-dense, 256 wide)
    h_ref : (BT, N)          VMEM scratch: carry state across chunks
    """
    c = pl.program_id(1)                 # chunk index (inner, "arbitrary")
    n = h_ref.shape[1]
    tn = o_ref.shape[2]

    # Reset the carry at the start of every batch tile's chunk sweep.
    @pl.when(c == 0)
    def _():
        h_ref[...] = jnp.zeros_like(h_ref)

    # Whole chunk = two dense MXU matmuls; no per-timestep serial chain.
    y = (
        jnp.dot(x_ref[0], wu_ref[...], preferred_element_type=jnp.float32)
        + jnp.dot(h_ref[...], pc_ref[...], preferred_element_type=jnp.float32)
    )
    o_ref[0] = y.astype(o_ref.dtype)     # single lane-dense block store
    h_ref[...] = y[:, tn - n:]           # last timestep of the chunk = new carry


# ------------------------ chunk-operator precompute -------------------------

def _precompute_chunk_operators(A, B, chunk_len):
    """Builds W_u (T*D_in, T*N) and P_carry (N, T*N) for the chunked scan.

    Within a chunk (local times 0..T-1, carry h0 from the previous chunk):
        h_j = h0 @ (A^T)^(j+1) + sum_{i<=j} (x_i @ B^T) @ (A^T)^(j-i)
    so with X_flat = [x_0 | ... | x_{T-1}] and Y_flat = [h_0 | ... | h_{T-1}]:
        Y_flat = X_flat @ W_u + h0 @ P_carry
    """
    n = A.shape[0]
    d_in = B.shape[1]
    AT = A.T.astype(jnp.float32)
    BT = B.T.astype(jnp.float32)

    powers = [jnp.eye(n, dtype=jnp.float32)]        # (A^T)^k, k = 0..T
    for _ in range(chunk_len):
        powers.append(powers[-1] @ AT)

    zero_dn = jnp.zeros((d_in, n), jnp.float32)
    wu_rows = []
    for i in range(chunk_len):
        blocks = [BT @ powers[j - i] if j >= i else zero_dn
                  for j in range(chunk_len)]
        wu_rows.append(jnp.concatenate(blocks, axis=1))
    w_u = jnp.concatenate(wu_rows, axis=0)           # (T*D_in, T*N)

    p_carry = jnp.concatenate(powers[1:], axis=1)    # (N, T*N)
    return w_u, p_carry


# ----------------------------- pallas_call wrapper ---------------------------

def s4_layer_pallas(xb, A, B, chunk_len):
    """xb: (batch, seq_len, D_in) float32 -> (batch, seq_len, N) float32."""
    batch, seq_len, d_in = xb.shape
    n = A.shape[0]
    t = chunk_len

    n_chunks = -(-seq_len // t)
    seq_pad = n_chunks * t

    # Batch tiling: one tile for small batch; 256-row tiles (8-aligned) above.
    max_bt = 256
    if batch <= max_bt:
        bt, batch_pad = batch, batch
    else:
        bt = max_bt
        batch_pad = -(-batch // bt) * bt

    xb = jnp.pad(xb, ((0, batch_pad - batch), (0, seq_pad - seq_len), (0, 0)))
    # (batch_pad, seq_pad, D_in) -> (n_chunks, batch_pad, T*D_in): each chunk's
    # timesteps are flattened into the lane axis -> dense MXU operand.
    xc = jnp.swapaxes(xb.reshape(batch_pad, n_chunks, t * d_in), 0, 1)

    w_u, p_carry = _precompute_chunk_operators(A, B, t)

    n_batch_tiles = batch_pad // bt
    grid_spec = pltpu.PrefetchScalarGridSpec(
        num_scalar_prefetch=0,
        grid=(n_batch_tiles, n_chunks),
        in_specs=[
            pl.BlockSpec((1, bt, t * d_in), lambda b, c: (c, b, 0)),
            pl.BlockSpec((t * d_in, t * n), lambda b, c: (0, 0)),
            pl.BlockSpec((n, t * n), lambda b, c: (0, 0)),
        ],
        out_specs=pl.BlockSpec((1, bt, t * n), lambda b, c: (c, b, 0)),
        scratch_shapes=[pltpu.VMEM((bt, n), jnp.float32)],
    )

    y = pl.pallas_call(
        s4_chunk_kernel,
        out_shape=jax.ShapeDtypeStruct((n_chunks, batch_pad, t * n), jnp.float32),
        grid_spec=grid_spec,
        compiler_params=pltpu.CompilerParams(
            dimension_semantics=("parallel", "arbitrary"),
        ),
    )(xc, w_u, p_carry)

    # (n_chunks, batch_pad, T*N) -> (batch, seq_len, N)
    y = jnp.swapaxes(y, 0, 1).reshape(batch_pad, seq_pad, n)
    return y[:batch, :seq_len, :]


# ----------------------------- Model wrapper --------------------------------

def s4_model_forward(x, A, B, l_max, chunk_len=8):
    """Mirrors S4Model.forward: (seq, batch, D_in) -> (seq, batch, N).

    The original module zero-pads time to l_max, runs the layer, and truncates
    back to seq; for a causal recurrence starting from h0 = 0 this is exactly
    equivalent to computing only the first seq steps, so the padded tail is
    never computed (perf feedback).
    """
    seq_len = x.shape[0]
    assert seq_len <= l_max, "sequence longer than l_max"
    xb = jnp.swapaxes(x, 0, 1)                       # (batch, seq, D_in)
    h = s4_layer_pallas(xb, A, B, chunk_len)         # (batch, seq, N)
    return jnp.swapaxes(h, 0, 1)                     # (seq, batch, N)


# Pure-JAX reference (sequential lax.scan) for correctness check.
def s4_model_reference(x, A, B, l_max):
    xb = jnp.swapaxes(x, 0, 1)
    seq_len = xb.shape[1]
    xb = jnp.pad(xb, ((0, 0), (0, l_max - seq_len), (0, 0)))

    def step(h, xt):
        h = h @ A.T + xt @ B.T
        return h, h

    h0 = jnp.zeros((xb.shape[0], A.shape[0]), jnp.float32)
    _, ys = lax.scan(step, h0, jnp.swapaxes(xb, 0, 1))   # (l_max, batch, N)
    h = jnp.swapaxes(ys, 0, 1)[:, :seq_len, :]
    return jnp.swapaxes(h, 0, 1)


# --------------------------------- main --------------------------------------

if __name__ == "__main__":
    input_dim = 4
    hidden_dim = 32
    output_dim = 8     # readout exists in __init__ but is unused by forward
    l_max = 16
    seq_len = 8
    batch = 2

    key = jax.random.PRNGKey(0)
    kx, ka, kb, kw = jax.random.split(key, 4)

    # Deterministic synthetic parameters (stable A so the scan is well-behaved).
    A = 0.1 * jax.random.normal(ka, (hidden_dim, hidden_dim), jnp.float32)
    B = jax.random.normal(kb, (hidden_dim, input_dim), jnp.float32)
    # Unused readout weight (parity with torch.nn.Linear(hidden_dim, output_dim, bias=False)).
    W_readout = jax.random.normal(kw, (output_dim, hidden_dim), jnp.float32)

    # Input in PyTorch convention: (seq, batch, input_dim).
    x = jax.random.normal(kx, (seq_len, batch, input_dim), jnp.float32)

    fwd = jax.jit(lambda xx, aa, bb: s4_model_forward(xx, aa, bb, l_max))
    out = jax.block_until_ready(fwd(x, A, B))

    ref = jax.block_until_ready(s4_model_reference(x, A, B, l_max))

    assert out.shape == (seq_len, batch, hidden_dim), out.shape
    assert jnp.allclose(out, ref, atol=1e-4, rtol=1e-4), float(
        jnp.max(jnp.abs(out - ref)))

    print("KERNEL_OK")
</pallas_src>

<mosaic_0001>
module attributes {stable_mosaic.version = 11 : i64} {
  func.func @s4_chunk_kernel(%arg0: i32, %arg1: i32, %arg2: memref<1x2x32xf32, #tpu.memory_space<vmem>>, %arg3: memref<32x256xf32, #tpu.memory_space<vmem>>, %arg4: memref<32x256xf32, #tpu.memory_space<vmem>>, %arg5: memref<1x2x256xf32, #tpu.memory_space<vmem>>, %arg6: memref<2x32xf32, #tpu.memory_space<vmem>>) attributes {dimension_semantics = [#tpu.dimension_semantics<parallel>, #tpu.dimension_semantics<arbitrary>], iteration_bounds = array<i64: 1, 1>, scalar_prefetch = 0 : i64, scratch_operands = 1 : i64, tpu.core_type = #tpu.core_type<tc>, window_params = [{transform_indices = @transform_0, window_bounds = array<i64: 1, 2, 32>}, {pipeline_mode = #tpu.pipeline_mode<synchronous>, transform_indices = @transform_1, window_bounds = array<i64: 32, 256>}, {pipeline_mode = #tpu.pipeline_mode<synchronous>, transform_indices = @transform_2, window_bounds = array<i64: 32, 256>}, {transform_indices = @transform_3, window_bounds = array<i64: 1, 2, 256>}]} {
    %c0_i32 = arith.constant 0 : i32
    %0 = arith.cmpi eq, %arg1, %c0_i32 : i32
    %1 = arith.extui %0 : i1 to i32
    %c0_i32_0 = arith.constant 0 : i32
    %2 = arith.cmpi ne, %1, %c0_i32_0 : i32
    scf.if %2 {
      %cst_15 = arith.constant 0.000000e+00 : f32
      %16 = vector.broadcast %cst_15 : f32 to vector<2x32xf32>
      %c0_16 = arith.constant 0 : index
      %c0_17 = arith.constant 0 : index
      %17 = vector.load %arg6[%c0_16, %c0_17] : memref<2x32xf32, #tpu.memory_space<vmem>>, vector<2x32xf32>
      tpu.vector_store %arg6[%c0_16, %c0_17], %16 {strides = array<i32>} : memref<2x32xf32, #tpu.memory_space<vmem>>, vector<2x32xf32>,
    } else {
    }
    %c0 = arith.constant 0 : index
    %c0_1 = arith.constant 0 : index
    %c0_2 = arith.constant 0 : index
    %3 = vector.load %arg2[%c0, %c0_1, %c0_2] : memref<1x2x32xf32, #tpu.memory_space<vmem>>, vector<1x2x32xf32>
    %4 = vector.shape_cast %3 : vector<1x2x32xf32> to vector<2x32xf32>
    %c0_3 = arith.constant 0 : index
    %c0_4 = arith.constant 0 : index
    %5 = vector.load %arg3[%c0_3, %c0_4] : memref<32x256xf32, #tpu.memory_space<vmem>>, vector<32x256xf32>
    %cst = arith.constant dense<0.000000e+00> : vector<2x256xf32>
    %6 = tpu.matmul %4, %5, %cst {dimension_numbers = #tpu.dot_dimension_numbers<[1], [0], [0], [1], [0, 0, 1, 1], [], []>} : vector<2x32xf32>, vector<32x256xf32>, vector<2x256xf32> -> vector<2x256xf32>
    %c0_5 = arith.constant 0 : index
    %c0_6 = arith.constant 0 : index
    %7 = vector.load %arg6[%c0_5, %c0_6] : memref<2x32xf32, #tpu.memory_space<vmem>>, vector<2x32xf32>
    %c0_7 = arith.constant 0 : index
    %c0_8 = arith.constant 0 : index
    %8 = vector.load %arg4[%c0_7, %c0_8] : memref<32x256xf32, #tpu.memory_space<vmem>>, vector<32x256xf32>
    %cst_9 = arith.constant dense<0.000000e+00> : vector<2x256xf32>
    %9 = tpu.matmul %7, %8, %cst_9 {dimension_numbers = #tpu.dot_dimension_numbers<[1], [0], [0], [1], [0, 0, 1, 1], [], []>} : vector<2x32xf32>, vector<32x256xf32>, vector<2x256xf32> -> vector<2x256xf32>
    %10 = arith.addf %6, %9 : vector<2x256xf32>
    %c0_10 = arith.constant 0 : index
    %c0_11 = arith.constant 0 : index
    %c0_12 = arith.constant 0 : index
    %11 = vector.load %arg5[%c0_10, %c0_11, %c0_12] : memref<1x2x256xf32, #tpu.memory_space<vmem>>, vector<1x2x256xf32>
    %12 = vector.shape_cast %11 : vector<1x2x256xf32> to vector<2x256xf32>
    %13 = vector.shape_cast %10 : vector<2x256xf32> to vector<1x2x256xf32>
    tpu.vector_store %arg5[%c0_10, %c0_11, %c0_12], %13 {strides = array<i32>} : memref<1x2x256xf32, #tpu.memory_space<vmem>>, vector<1x2x256xf32>,
    %14 = vector.extract_strided_slice %10 {offsets = [0, 224], sizes = [2, 32], strides = [1, 1]} : vector<2x256xf32> to vector<2x32xf32>
    %c0_13 = arith.constant 0 : index
    %c0_14 = arith.constant 0 : index
    %15 = vector.load %arg6[%c0_13, %c0_14] : memref<2x32xf32, #tpu.memory_space<vmem>>, vector<2x32xf32>
    tpu.vector_store %arg6[%c0_13, %c0_14], %14 {strides = array<i32>} : memref<2x32xf32, #tpu.memory_space<vmem>>, vector<2x32xf32>,
    return
  }
  func.func @transform_0(%arg0: i32, %arg1: i32) -> (i32, i32, i32) {
    %c0_i32 = arith.constant 0 : i32
    %c0_i32_0 = arith.constant 0 : i32
    return %arg1, %arg0, %c0_i32 : i32, i32, i32
  }
  func.func @transform_1(%arg0: i32, %arg1: i32) -> (i32, i32) {
    %c0_i32 = arith.constant 0 : i32
    %c0_i32_0 = arith.constant 0 : i32
    %c0_i32_1 = arith.constant 0 : i32
    return %c0_i32, %c0_i32_0 : i32, i32
  }
  func.func @transform_2(%arg0: i32, %arg1: i32) -> (i32, i32) {
    %c0_i32 = arith.constant 0 : i32
    %c0_i32_0 = arith.constant 0 : i32
    %c0_i32_1 = arith.constant 0 : i32
    return %c0_i32, %c0_i32_0 : i32, i32
  }
  func.func @transform_3(%arg0: i32, %arg1: i32) -> (i32, i32, i32) {
    %c0_i32 = arith.constant 0 : i32
    %c0_i32_0 = arith.constant 0 : i32
    return %arg1, %arg0, %c0_i32 : i32, i32, i32
  }
}

</mosaic_0001>

<bundles_post_ra>
// kernel: _lambda_.1
= control target key start
LH: loop header
LB: loop body
LE: loop exit
PB: predicated region body
PF: predicated region fallthrough
CT: control target
= control target key end

     0   :  { %vm18_vm0 = vcmask 254976   ;;  %v213_v3 = vmov 0.0   ;;  %vm38_vm1 = vcmask 261120   ;;  %s291_s2 = inlined_call_operand.vmem [shape: f32[32,256], index: 2, kind: input, shape index: {}]   ;;  %s292_s1 = inlined_call_operand.vmem [shape: f32[32,256], index: 1, kind: input, shape index: {}]   ;;  %s293_s0 = inlined_call_operand.vmem [shape: f32[1,2,32], index: 0, kind: input, shape index: {}]   ;;  %s294_s3 = inlined_call_operand.vmem [shape: f32[1,2,256], index: 3, kind: output, shape index: {}]  }
   0x1   :  { %v37_v0 = vld [vmem:[%s291_s2 + $0x38] sm:$0xff]  ;;  %v36_v2 = vld [vmem:[%s291_s2 + $0x30] sm:$0xff]  ;;  %19 = vst.msk [vmem:[#allocation2] sm:$0x3] %vm18_vm0, %v213_v3  ;;  %106 = vmatprep.mubr.f32.mxu0 %v213_v3  ;;  %180 = vmatprep.mubr.f32.mxu1 %v213_v3  ;;  %v35_v5 = vld [vmem:[%s291_s2 + $0x28] sm:$0xff] }
   0x2   :  { %v28_v1 = vld [vmem:[%s292_s1 + $0x38] sm:$0xff]  ;;  %66 = vmatprep.subr.mxu0 %v37_v0  ;;  %v27_v4 = vld [vmem:[%s292_s1 + $0x30] sm:$0xff]  ;;  %v26_v6 = vld [vmem:[%s292_s1 + $0x28] sm:$0xff] }
   0x3   :  { %140 = vmatprep.subr.mxu1 %v28_v1  ;;  %67 = vmatpush1.msra.mxu0 %v36_v2  ;;  %v34_v7 = vld [vmem:[%s291_s2 + $0x20] sm:$0xff]  ;;  %v33_v9 = vld [vmem:[%s291_s2 + $0x18] sm:$0xff]  ;;  %v32_v11 = vld [vmem:[%s291_s2 + $0x10] sm:$0xff] }
   0x4   :  { %141 = vmatpush1.msra.mxu1 %v27_v4  ;;  %v25_v8 = vld [vmem:[%s292_s1 + $0x20] sm:$0xff]  ;;  %68 = vmatprep.subr.mxu0 %v35_v5  ;;  %v24_v10 = vld [vmem:[%s292_s1 + $0x18] sm:$0xff]  ;;  %v23_v12 = vld [vmem:[%s292_s1 + $0x10] sm:$0xff] }
   0x5   :  { %142 = vmatprep.subr.mxu1 %v26_v6  ;;  %69 = vmatpush1.msra.mxu0 %v34_v7  ;;  %v31_v13 = vld [vmem:[%s291_s2 + $0x8] sm:$0xff]  ;;  %v30_v15 = vld [vmem:[%s291_s2] sm:$0xff] }
   0x6   :  { %143 = vmatpush1.msra.mxu1 %v25_v8  ;;  %v22_v14 = vld [vmem:[%s292_s1 + $0x8] sm:$0xff]  ;;  %70 = vmatprep.subr.mxu0 %v33_v9  ;;  %v21_v16 = vld [vmem:[%s292_s1] sm:$0xff]  ;;  %s214_s1 = smov 32  }
   0x7   :  { %144 = vmatprep.subr.mxu1 %v24_v10  ;;  %71 = vmatpush1.msra.mxu0 %v32_v11  ;;  %v20_v17 = vld [vmem:[%s293_s0] sm:$0x3] }
   0x8   :  { %145 = vmatpush1.msra.mxu1 %v23_v12  ;;  %72 = vmatprep.subr.mxu0 %v31_v13  ;;  %v29_v18 = vld [vmem:[#allocation2] sm:$0x3] }
   0x9   :  { %146 = vmatprep.subr.mxu1 %v22_v14  ;;  %73 = vmatpush1.msra.mxu0 %v30_v15 }
   0xa   :  { %147 = vmatpush1.msra.mxu1 %v21_v16  ;;  %208 = vmatmul.mubr.msk.f32.vlgmr.msra.gmra.mxu0 %vm38_vm1, %v29_v18 }
   0xb   :  { %209 = vmatmul.mubr.msk.f32.vlgmr.msra.gmra.mxu1 %vm38_vm1, %v20_v17 }
  0xca   :  { %v108_v19 = vpop.f32.mrf.mxu0 }
  0xcb   :  { %v182_v20 = vpop.f32.mrf.mxu1 }
  0xcc   :  { %v110_v21 = vpop.f32.mrf.mxu0  ;;  %v183_v23 = vadd.f32 %v182_v20, %v108_v19 }
  0xcd   :  { %v184_v22 = vpop.f32.mrf.mxu1 }
  0xce   :  { %v185_v24 = vadd.f32 %v184_v22, %v110_v21 }
  0xd0   :  { %v189_v25 = vcombine.low %v183_v23, %v185_v24  ;;  %199 = vrot.lane.b32.xlu0 %v185_v24, %s214_s1 }
  0xd2   :  { %210 = vst.sshfl [vmem:[%s294_s3] sm:$0x33 pattern:$0x76325410] %v189_v25 }
 0x142   :  { %v200_v26 = vpop.permute.xlu0 %199 }
 0x143   :  { %203 = vst.msk [vmem:[#allocation2] sm:$0x3] %vm18_vm0, %v200_v26 }

</bundles_post_ra>
